<compile_context>
chip_gen: v7x
topology: tpu7x:2x2x1
jax: 0.10.0
libtpu: 0.0.40
codegen_flags: <defaults>
</compile_context>

<pallas_src>
import functools

import jax
import jax.numpy as jnp
from jax import lax
from jax.experimental import pallas as pl
from jax.experimental.pallas import tpu as pltpu
from jax.scipy.linalg import expm


def _svd_combo_kernel(a_ref, x0_ref, bt_ref, bx_ref, out_ref, x_scratch, *,
                      step, tc):
    # Layout: state Xi kept as (tb, n) -- batch tile on sublanes, state dim n
    # on lanes.  This is the exact transpose of the PyTorch recurrence:
    #   Xi <- (1 + step*a) * Xi + step * (relu(Xi) @ B^T + bx^T)
    # Output block is (tb, tc, n); out[:, j, :] holds the state after
    # (t_chunk*tc + j) Euler updates (index 0 == X0).
    t_chunk = pl.program_id(1)

    # (Re)load the initial state at the first tmax chunk of each batch tile.
    @pl.when(t_chunk == 0)
    def _():
        x_scratch[...] = x0_ref[...]

    # Hoisted loop invariants: A = a*I folded into a scalar decay; B^T and the
    # bias pre-scaled by `step`; bias pre-broadcast to the batch tile once.
    decay = 1.0 + step * a_ref[0, 0]
    bt_s = step * bt_ref[...]
    bias = jnp.broadcast_to(step * bx_ref[...], x0_ref.shape)

    def body(j, x):
        out_ref[:, j, :] = x          # write current state, then advance it
        x_new = decay * x + jnp.dot(jnp.maximum(x, 0.0), bt_s,
                                    preferred_element_type=jnp.float32) + bias
        return x_new

    unroll = True if tc <= 8 else 8   # cap unroll to avoid vreg spill
    x = lax.fori_loop(0, tc, body, x_scratch[...], unroll=unroll)
    x_scratch[...] = x                # carry state to the next tmax chunk


def svd_combo_forward(x0, a_neg, B, bx_col, *, tmax, step, tb=8, tc=None):
    """x0: (bs, n).  a_neg: (1,1) diagonal value of A (= -(|a|+eps)).
    B: (n, n).  bx_col: (n, 1).  Returns (bs, tmax, n) float32."""
    bs, n = x0.shape
    if tc is None:
        tc = tmax
    assert tmax % tc == 0, "tc must divide tmax"
    assert tc == tmax or tc % 8 == 0, "tc must be a sublane multiple (or == tmax)"
    assert tb % 8 == 0, "batch tile must be a sublane multiple"

    # Pad batch up to a multiple of the batch tile (sliced off at the end).
    bs_p = int(pl.cdiv(bs, tb)) * tb
    x0_p = x0.astype(jnp.float32)
    if bs_p != bs:
        x0_p = jnp.pad(x0_p, ((0, bs_p - bs), (0, 0)))

    bt = jnp.transpose(B).astype(jnp.float32)                 # used as x @ B^T
    bx_row = jnp.reshape(bx_col.astype(jnp.float32), (1, n))  # bias as a row
    a_smem = jnp.reshape(a_neg.astype(jnp.float32), (1, 1))   # scalar -> SMEM

    grid = (bs_p // tb, tmax // tc)
    kernel = functools.partial(_svd_combo_kernel, step=float(step), tc=tc)

    flops = 2.0 * bs_p * n * n * tmax + 6.0 * bs_p * n * tmax
    bytes_accessed = 4 * (bs_p * n + n * n + n + bs_p * tmax * n)

    out = pl.pallas_call(
        kernel,
        out_shape=jax.ShapeDtypeStruct((bs_p, tmax, n), jnp.float32),
        grid=grid,
        in_specs=[
            pl.BlockSpec(memory_space=pltpu.MemorySpace.SMEM),   # a scalar (1,1)
            pl.BlockSpec((tb, n), lambda i, t: (i, 0)),          # x0 batch tile
            pl.BlockSpec((n, n), lambda i, t: (0, 0)),           # B^T (stays VMEM-resident)
            pl.BlockSpec((1, n), lambda i, t: (0, 0)),           # bias row
        ],
        out_specs=pl.BlockSpec((tb, tc, n), lambda i, t: (i, t, 0)),
        scratch_shapes=[pltpu.VMEM((tb, n), jnp.float32)],       # Xi carry across t chunks
        compiler_params=pltpu.CompilerParams(
            dimension_semantics=("parallel", "arbitrary")),
        cost_estimate=pl.CostEstimate(flops=int(flops), transcendentals=0,
                                      bytes_accessed=int(bytes_accessed)),
    )(a_smem, x0_p, bt, bx_row)

    return out[:bs] if bs_p != bs else out


def build_params(key, n, g):
    """Deterministic synthetic init + the parametrizations from __init__/get_AB."""
    k1, k2, k3, k4, k5 = jax.random.split(key, 5)
    a_raw = jax.random.normal(k1, (1, 1), jnp.float32)          # A_.weight (1,1)
    theta_raw = jax.random.uniform(k2, (n, n), jnp.float32, 0.5, 1.5)
    u_raw = jax.random.normal(k3, (n, n), jnp.float32)
    sigma_raw = jax.random.normal(k4, (n, n), jnp.float32)
    v_raw = jax.random.normal(k5, (n, n), jnp.float32)

    eps = 1e-5
    eye = jnp.eye(n, dtype=jnp.float32)

    a_pos = jnp.abs(a_raw) + eps                                  # Positive
    theta = eye * (jnp.abs(theta_raw) + eps)                      # Pos_Diag
    u = expm(jnp.triu(u_raw, 1) - jnp.triu(u_raw, 1).T)           # Skew -> expm
    sigma = (1.0 / g) * eye * jnp.exp(-sigma_raw ** 2)            # Bounded_PositiveDiag
    v = expm(jnp.triu(v_raw, 1) - jnp.triu(v_raw, 1).T)           # Skew -> expm

    # get_AB(): A = -a_pos * I  ->  pass only the scalar diagonal value.
    a_neg = -a_pos                                                # (1, 1)
    B = v.T @ theta
    B = sigma @ B
    B = u @ B
    B = jnp.linalg.inv(theta) @ B

    # bx = nn.Linear(1, n, bias=False), weight zero-initialized: shape (n, 1)
    bx_col = jnp.zeros((n, 1), jnp.float32)
    return a_neg, B, bx_col


def reference_forward(x0, a_neg, B, bx_col, *, tmax, step):
    """Plain-JAX transcription of SVD_Combo.forward for verification."""
    bs, n = x0.shape
    A = a_neg[0, 0] * jnp.eye(n, dtype=jnp.float32)
    bx_tiled = jnp.tile(bx_col, (1, bs))
    xi = x0.T
    xs = [xi]
    for _ in range(tmax - 1):
        xi = xi + step * (A @ xi + B @ jnp.maximum(xi, 0.0) + bx_tiled)
        xs.append(xi)
    X = jnp.stack(xs, axis=0)            # (tmax, n, bs)
    X = jnp.transpose(X, (2, 1, 0))      # transpose(0, 2)
    return jnp.transpose(X, (0, 2, 1))   # transpose(1, 2) -> (bs, tmax, n)


if __name__ == "__main__":
    n, tmax, step, g = 32, 16, 0.01, 2.0
    bs = 16

    key = jax.random.PRNGKey(0)
    kp, kx, kb = jax.random.split(key, 3)
    a_neg, B, _bx_zero = build_params(kp, n, g)
    # The module also supports a user-supplied bias (bx passed a priori); use a
    # nonzero one so the bias path is actually exercised by the check.
    bx_col = 0.1 * jax.random.normal(kb, (n, 1), jnp.float32)
    x0 = jax.random.normal(kx, (bs, n), jnp.float32)

    out = svd_combo_forward(x0, a_neg, B, bx_col, tmax=tmax, step=step,
                            tb=8, tc=8)
    out = jax.block_until_ready(out)

    ref = reference_forward(x0, a_neg, B, bx_col, tmax=tmax, step=step)
    assert out.shape == (bs, tmax, n), out.shape
    assert jnp.allclose(out, ref, rtol=2e-3, atol=2e-3)

    print("KERNEL_OK")
</pallas_src>

<mosaic_0001>
module attributes {stable_mosaic.version = 11 : i64} {
  func.func @_svd_combo_kernel(%arg0: i32, %arg1: i32, %arg2: memref<1x1xf32, #tpu.memory_space<smem>>, %arg3: memref<8x32xf32, #tpu.memory_space<vmem>>, %arg4: memref<32x32xf32, #tpu.memory_space<vmem>>, %arg5: memref<1x32xf32, #tpu.memory_space<vmem>>, %arg6: memref<8x8x32xf32, #tpu.memory_space<vmem>>, %arg7: memref<8x32xf32, #tpu.memory_space<vmem>>) attributes {dimension_semantics = [#tpu.dimension_semantics<parallel>, #tpu.dimension_semantics<arbitrary>], iteration_bounds = array<i64: 2, 2>, scalar_prefetch = 0 : i64, scratch_operands = 1 : i64, tpu.core_type = #tpu.core_type<tc>, window_params = [{transform_indices = @transform_0, window_bounds = array<i64: 1, 1>}, {transform_indices = @transform_1, window_bounds = array<i64: 8, 32>}, {pipeline_mode = #tpu.pipeline_mode<synchronous>, transform_indices = @transform_2, window_bounds = array<i64: 32, 32>}, {pipeline_mode = #tpu.pipeline_mode<synchronous>, transform_indices = @transform_3, window_bounds = array<i64: 1, 32>}, {transform_indices = @transform_4, window_bounds = array<i64: 8, 8, 32>}]} {
    %c0_i32 = arith.constant 0 : i32
    %0 = arith.cmpi eq, %arg1, %c0_i32 : i32
    %1 = arith.extui %0 : i1 to i32
    %c0_i32_0 = arith.constant 0 : i32
    %2 = arith.cmpi ne, %1, %c0_i32_0 : i32
    scf.if %2 {
      %c0_46 = arith.constant 0 : index
      %c0_47 = arith.constant 0 : index
      %104 = vector.load %arg3[%c0_46, %c0_47] : memref<8x32xf32, #tpu.memory_space<vmem>>, vector<8x32xf32>
      %c0_48 = arith.constant 0 : index
      %c0_49 = arith.constant 0 : index
      %105 = vector.load %arg7[%c0_48, %c0_49] : memref<8x32xf32, #tpu.memory_space<vmem>>, vector<8x32xf32>
      tpu.vector_store %arg7[%c0_48, %c0_49], %104 {strides = array<i32>} : memref<8x32xf32, #tpu.memory_space<vmem>>, vector<8x32xf32>,
    } else {
    }
    %c0 = arith.constant 0 : index
    %c0_1 = arith.constant 0 : index
    %3 = memref.load %arg2[%c0, %c0_1] : memref<1x1xf32, #tpu.memory_space<smem>>
    %cst = arith.constant 0.00999999977 : f32
    %4 = arith.mulf %cst, %3 : f32
    %cst_2 = arith.constant 1.000000e+00 : f32
    %5 = arith.addf %cst_2, %4 : f32
    %c0_3 = arith.constant 0 : index
    %c0_4 = arith.constant 0 : index
    %6 = vector.load %arg4[%c0_3, %c0_4] : memref<32x32xf32, #tpu.memory_space<vmem>>, vector<32x32xf32>
    %cst_5 = arith.constant 0.00999999977 : f32
    %7 = vector.broadcast %cst_5 : f32 to vector<32x32xf32>
    %8 = arith.mulf %7, %6 : vector<32x32xf32>
    %c0_6 = arith.constant 0 : index
    %c0_7 = arith.constant 0 : index
    %9 = vector.load %arg5[%c0_6, %c0_7] : memref<1x32xf32, #tpu.memory_space<vmem>>, vector<1x32xf32>
    %cst_8 = arith.constant 0.00999999977 : f32
    %10 = vector.broadcast %cst_8 : f32 to vector<1x32xf32>
    %11 = arith.mulf %10, %9 : vector<1x32xf32>
    %12 = vector.shape_cast %11 : vector<1x32xf32> to vector<1x32xf32>
    %13 = vector.broadcast %12 : vector<1x32xf32> to vector<8x32xf32>
    %c0_9 = arith.constant 0 : index
    %c0_10 = arith.constant 0 : index
    %14 = vector.load %arg7[%c0_9, %c0_10] : memref<8x32xf32, #tpu.memory_space<vmem>>, vector<8x32xf32>
    %c0_i32_11 = arith.constant 0 : i32
    %c0_12 = arith.constant 0 : index
    %15 = arith.index_cast %c0_i32_11 : i32 to index
    %c0_13 = arith.constant 0 : index
    %16 = vector.load %arg6[%c0_12, %15, %c0_13] : memref<8x8x32xf32, #tpu.memory_space<vmem>>, vector<8x1x32xf32>
    %17 = vector.shape_cast %16 : vector<8x1x32xf32> to vector<8x32xf32>
    %18 = vector.shape_cast %14 : vector<8x32xf32> to vector<8x1x32xf32>
    tpu.vector_store %arg6[%c0_12, %15, %c0_13], %18 {strides = array<i32>} : memref<8x8x32xf32, #tpu.memory_space<vmem>>, vector<8x1x32xf32>,
    %19 = vector.broadcast %5 : f32 to vector<8x32xf32>
    %20 = arith.mulf %19, %14 : vector<8x32xf32>
    %cst_14 = arith.constant 0.000000e+00 : f32
    %21 = vector.broadcast %cst_14 : f32 to vector<8x32xf32>
    %22 = arith.maximumf %14, %21 : vector<8x32xf32>
    %cst_15 = arith.constant dense<0.000000e+00> : vector<8x32xf32>
    %23 = tpu.matmul %22, %8, %cst_15 {dimension_numbers = #tpu.dot_dimension_numbers<[1], [0], [0], [1], [0, 0, 1, 1], [], []>} : vector<8x32xf32>, vector<32x32xf32>, vector<8x32xf32> -> vector<8x32xf32>
    %24 = arith.addf %20, %23 : vector<8x32xf32>
    %25 = arith.addf %24, %13 : vector<8x32xf32>
    %c1_i32 = arith.constant 1 : i32
    %c0_16 = arith.constant 0 : index
    %26 = arith.index_cast %c1_i32 : i32 to index
    %c0_17 = arith.constant 0 : index
    %27 = vector.load %arg6[%c0_16, %26, %c0_17] : memref<8x8x32xf32, #tpu.memory_space<vmem>>, vector<8x1x32xf32>
    %28 = vector.shape_cast %27 : vector<8x1x32xf32> to vector<8x32xf32>
    %29 = vector.shape_cast %25 : vector<8x32xf32> to vector<8x1x32xf32>
    tpu.vector_store %arg6[%c0_16, %26, %c0_17], %29 {strides = array<i32>} : memref<8x8x32xf32, #tpu.memory_space<vmem>>, vector<8x1x32xf32>,
    %30 = vector.broadcast %5 : f32 to vector<8x32xf32>
    %31 = arith.mulf %30, %25 : vector<8x32xf32>
    %cst_18 = arith.constant 0.000000e+00 : f32
    %32 = vector.broadcast %cst_18 : f32 to vector<8x32xf32>
    %33 = arith.maximumf %25, %32 : vector<8x32xf32>
    %cst_19 = arith.constant dense<0.000000e+00> : vector<8x32xf32>
    %34 = tpu.matmul %33, %8, %cst_19 {dimension_numbers = #tpu.dot_dimension_numbers<[1], [0], [0], [1], [0, 0, 1, 1], [], []>} : vector<8x32xf32>, vector<32x32xf32>, vector<8x32xf32> -> vector<8x32xf32>
    %35 = arith.addf %31, %34 : vector<8x32xf32>
    %36 = arith.addf %35, %13 : vector<8x32xf32>
    %c2_i32 = arith.constant 2 : i32
    %c0_20 = arith.constant 0 : index
    %37 = arith.index_cast %c2_i32 : i32 to index
    %c0_21 = arith.constant 0 : index
    %38 = vector.load %arg6[%c0_20, %37, %c0_21] : memref<8x8x32xf32, #tpu.memory_space<vmem>>, vector<8x1x32xf32>
    %39 = vector.shape_cast %38 : vector<8x1x32xf32> to vector<8x32xf32>
    %40 = vector.shape_cast %36 : vector<8x32xf32> to vector<8x1x32xf32>
    tpu.vector_store %arg6[%c0_20, %37, %c0_21], %40 {strides = array<i32>} : memref<8x8x32xf32, #tpu.memory_space<vmem>>, vector<8x1x32xf32>,
    %41 = vector.broadcast %5 : f32 to vector<8x32xf32>
    %42 = arith.mulf %41, %36 : vector<8x32xf32>
    %cst_22 = arith.constant 0.000000e+00 : f32
    %43 = vector.broadcast %cst_22 : f32 to vector<8x32xf32>
    %44 = arith.maximumf %36, %43 : vector<8x32xf32>
    %cst_23 = arith.constant dense<0.000000e+00> : vector<8x32xf32>
    %45 = tpu.matmul %44, %8, %cst_23 {dimension_numbers = #tpu.dot_dimension_numbers<[1], [0], [0], [1], [0, 0, 1, 1], [], []>} : vector<8x32xf32>, vector<32x32xf32>, vector<8x32xf32> -> vector<8x32xf32>
    %46 = arith.addf %42, %45 : vector<8x32xf32>
    %47 = arith.addf %46, %13 : vector<8x32xf32>
    %c3_i32 = arith.constant 3 : i32
    %c0_24 = arith.constant 0 : index
    %48 = arith.index_cast %c3_i32 : i32 to index
    %c0_25 = arith.constant 0 : index
    %49 = vector.load %arg6[%c0_24, %48, %c0_25] : memref<8x8x32xf32, #tpu.memory_space<vmem>>, vector<8x1x32xf32>
    %50 = vector.shape_cast %49 : vector<8x1x32xf32> to vector<8x32xf32>
    %51 = vector.shape_cast %47 : vector<8x32xf32> to vector<8x1x32xf32>
    tpu.vector_store %arg6[%c0_24, %48, %c0_25], %51 {strides = array<i32>} : memref<8x8x32xf32, #tpu.memory_space<vmem>>, vector<8x1x32xf32>,
    %52 = vector.broadcast %5 : f32 to vector<8x32xf32>
    %53 = arith.mulf %52, %47 : vector<8x32xf32>
    %cst_26 = arith.constant 0.000000e+00 : f32
    %54 = vector.broadcast %cst_26 : f32 to vector<8x32xf32>
    %55 = arith.maximumf %47, %54 : vector<8x32xf32>
    %cst_27 = arith.constant dense<0.000000e+00> : vector<8x32xf32>
    %56 = tpu.matmul %55, %8, %cst_27 {dimension_numbers = #tpu.dot_dimension_numbers<[1], [0], [0], [1], [0, 0, 1, 1], [], []>} : vector<8x32xf32>, vector<32x32xf32>, vector<8x32xf32> -> vector<8x32xf32>
    %57 = arith.addf %53, %56 : vector<8x32xf32>
    %58 = arith.addf %57, %13 : vector<8x32xf32>
    %c4_i32 = arith.constant 4 : i32
    %c0_28 = arith.constant 0 : index
    %59 = arith.index_cast %c4_i32 : i32 to index
    %c0_29 = arith.constant 0 : index
    %60 = vector.load %arg6[%c0_28, %59, %c0_29] : memref<8x8x32xf32, #tpu.memory_space<vmem>>, vector<8x1x32xf32>
    %61 = vector.shape_cast %60 : vector<8x1x32xf32> to vector<8x32xf32>
    %62 = vector.shape_cast %58 : vector<8x32xf32> to vector<8x1x32xf32>
    tpu.vector_store %arg6[%c0_28, %59, %c0_29], %62 {strides = array<i32>} : memref<8x8x32xf32, #tpu.memory_space<vmem>>, vector<8x1x32xf32>,
    %63 = vector.broadcast %5 : f32 to vector<8x32xf32>
    %64 = arith.mulf %63, %58 : vector<8x32xf32>
    %cst_30 = arith.constant 0.000000e+00 : f32
    %65 = vector.broadcast %cst_30 : f32 to vector<8x32xf32>
    %66 = arith.maximumf %58, %65 : vector<8x32xf32>
    %cst_31 = arith.constant dense<0.000000e+00> : vector<8x32xf32>
    %67 = tpu.matmul %66, %8, %cst_31 {dimension_numbers = #tpu.dot_dimension_numbers<[1], [0], [0], [1], [0, 0, 1, 1], [], []>} : vector<8x32xf32>, vector<32x32xf32>, vector<8x32xf32> -> vector<8x32xf32>
    %68 = arith.addf %64, %67 : vector<8x32xf32>
    %69 = arith.addf %68, %13 : vector<8x32xf32>
    %c5_i32 = arith.constant 5 : i32
    %c0_32 = arith.constant 0 : index
    %70 = arith.index_cast %c5_i32 : i32 to index
    %c0_33 = arith.constant 0 : index
    %71 = vector.load %arg6[%c0_32, %70, %c0_33] : memref<8x8x32xf32, #tpu.memory_space<vmem>>, vector<8x1x32xf32>
    %72 = vector.shape_cast %71 : vector<8x1x32xf32> to vector<8x32xf32>
    %73 = vector.shape_cast %69 : vector<8x32xf32> to vector<8x1x32xf32>
    tpu.vector_store %arg6[%c0_32, %70, %c0_33], %73 {strides = array<i32>} : memref<8x8x32xf32, #tpu.memory_space<vmem>>, vector<8x1x32xf32>,
    %74 = vector.broadcast %5 : f32 to vector<8x32xf32>
    %75 = arith.mulf %74, %69 : vector<8x32xf32>
    %cst_34 = arith.constant 0.000000e+00 : f32
    %76 = vector.broadcast %cst_34 : f32 to vector<8x32xf32>
    %77 = arith.maximumf %69, %76 : vector<8x32xf32>
    %cst_35 = arith.constant dense<0.000000e+00> : vector<8x32xf32>
    %78 = tpu.matmul %77, %8, %cst_35 {dimension_numbers = #tpu.dot_dimension_numbers<[1], [0], [0], [1], [0, 0, 1, 1], [], []>} : vector<8x32xf32>, vector<32x32xf32>, vector<8x32xf32> -> vector<8x32xf32>
    %79 = arith.addf %75, %78 : vector<8x32xf32>
    %80 = arith.addf %79, %13 : vector<8x32xf32>
    %c6_i32 = arith.constant 6 : i32
    %c0_36 = arith.constant 0 : index
    %81 = arith.index_cast %c6_i32 : i32 to index
    %c0_37 = arith.constant 0 : index
    %82 = vector.load %arg6[%c0_36, %81, %c0_37] : memref<8x8x32xf32, #tpu.memory_space<vmem>>, vector<8x1x32xf32>
    %83 = vector.shape_cast %82 : vector<8x1x32xf32> to vector<8x32xf32>
    %84 = vector.shape_cast %80 : vector<8x32xf32> to vector<8x1x32xf32>
    tpu.vector_store %arg6[%c0_36, %81, %c0_37], %84 {strides = array<i32>} : memref<8x8x32xf32, #tpu.memory_space<vmem>>, vector<8x1x32xf32>,
    %85 = vector.broadcast %5 : f32 to vector<8x32xf32>
    %86 = arith.mulf %85, %80 : vector<8x32xf32>
    %cst_38 = arith.constant 0.000000e+00 : f32
    %87 = vector.broadcast %cst_38 : f32 to vector<8x32xf32>
    %88 = arith.maximumf %80, %87 : vector<8x32xf32>
    %cst_39 = arith.constant dense<0.000000e+00> : vector<8x32xf32>
    %89 = tpu.matmul %88, %8, %cst_39 {dimension_numbers = #tpu.dot_dimension_numbers<[1], [0], [0], [1], [0, 0, 1, 1], [], []>} : vector<8x32xf32>, vector<32x32xf32>, vector<8x32xf32> -> vector<8x32xf32>
    %90 = arith.addf %86, %89 : vector<8x32xf32>
    %91 = arith.addf %90, %13 : vector<8x32xf32>
    %c7_i32 = arith.constant 7 : i32
    %c0_40 = arith.constant 0 : index
    %92 = arith.index_cast %c7_i32 : i32 to index
    %c0_41 = arith.constant 0 : index
    %93 = vector.load %arg6[%c0_40, %92, %c0_41] : memref<8x8x32xf32, #tpu.memory_space<vmem>>, vector<8x1x32xf32>
    %94 = vector.shape_cast %93 : vector<8x1x32xf32> to vector<8x32xf32>
    %95 = vector.shape_cast %91 : vector<8x32xf32> to vector<8x1x32xf32>
    tpu.vector_store %arg6[%c0_40, %92, %c0_41], %95 {strides = array<i32>} : memref<8x8x32xf32, #tpu.memory_space<vmem>>, vector<8x1x32xf32>,
    %96 = vector.broadcast %5 : f32 to vector<8x32xf32>
    %97 = arith.mulf %96, %91 : vector<8x32xf32>
    %cst_42 = arith.constant 0.000000e+00 : f32
    %98 = vector.broadcast %cst_42 : f32 to vector<8x32xf32>
    %99 = arith.maximumf %91, %98 : vector<8x32xf32>
    %cst_43 = arith.constant dense<0.000000e+00> : vector<8x32xf32>
    %100 = tpu.matmul %99, %8, %cst_43 {dimension_numbers = #tpu.dot_dimension_numbers<[1], [0], [0], [1], [0, 0, 1, 1], [], []>} : vector<8x32xf32>, vector<32x32xf32>, vector<8x32xf32> -> vector<8x32xf32>
    %101 = arith.addf %97, %100 : vector<8x32xf32>
    %102 = arith.addf %101, %13 : vector<8x32xf32>
    %c8_i32 = arith.constant 8 : i32
    %c0_44 = arith.constant 0 : index
    %c0_45 = arith.constant 0 : index
    %103 = vector.load %arg7[%c0_44, %c0_45] : memref<8x32xf32, #tpu.memory_space<vmem>>, vector<8x32xf32>
    tpu.vector_store %arg7[%c0_44, %c0_45], %102 {strides = array<i32>} : memref<8x32xf32, #tpu.memory_space<vmem>>, vector<8x32xf32>,
    return
  }
  func.func @transform_0(%arg0: i32, %arg1: i32) -> (i32, i32) {
    %c0_i32 = arith.constant 0 : i32
    %c0_i32_0 = arith.constant 0 : i32
    %c0_i32_1 = arith.constant 0 : i32
    return %c0_i32, %c0_i32_0 : i32, i32
  }
  func.func @transform_1(%arg0: i32, %arg1: i32) -> (i32, i32) {
    %c0_i32 = arith.constant 0 : i32
    %c0_i32_0 = arith.constant 0 : i32
    return %arg0, %c0_i32 : i32, i32
  }
  func.func @transform_2(%arg0: i32, %arg1: i32) -> (i32, i32) {
    %c0_i32 = arith.constant 0 : i32
    %c0_i32_0 = arith.constant 0 : i32
    %c0_i32_1 = arith.constant 0 : i32
    return %c0_i32, %c0_i32_0 : i32, i32
  }
  func.func @transform_3(%arg0: i32, %arg1: i32) -> (i32, i32) {
    %c0_i32 = arith.constant 0 : i32
    %c0_i32_0 = arith.constant 0 : i32
    %c0_i32_1 = arith.constant 0 : i32
    return %c0_i32, %c0_i32_0 : i32, i32
  }
  func.func @transform_4(%arg0: i32, %arg1: i32) -> (i32, i32, i32) {
    %c0_i32 = arith.constant 0 : i32
    %c0_i32_0 = arith.constant 0 : i32
    return %arg0, %arg1, %c0_i32 : i32, i32, i32
  }
}

</mosaic_0001>

<bundles_post_ra>
// kernel: tpu_custom_call.1
= control target key start
LH: loop header
LB: loop body
LE: loop exit
PB: predicated region body
PF: predicated region fallthrough
CT: control target
= control target key end

     0   :  { %s2612_s0 = inlined_call_operand.<no memory space> [shape: f32[1,1], index: 0, kind: input, shape index: {}]   ;;  %s2613_s1 = inlined_call_operand.hbm [shape: f32[16,32], index: 1, kind: input, shape index: {}]   ;;  %s2614_s2 = inlined_call_operand.hbm [shape: f32[32,32], index: 2, kind: input, shape index: {}]   ;;  %s2615_s3 = inlined_call_operand.vmem [shape: f32[1,32], index: 3, kind: input, shape index: {}]   ;;  %s2616_s4 = inlined_call_operand.hbm [shape: f32[16,16,32], index: 4, kind: output, shape index: {}]  }
   0x1   :  { %2627 = sst [smem:[#allocation17_spill]] %s2614_s2 }
   0x2   :  { %2628 = sst [smem:[#allocation18_spill]] %s2616_s4 }
   0x3   :  { %9 = sst [smem:[#allocation3]] %s2612_s0 }
   0x4   :  { %10 = vsyncpa [#allocation5], 0 }
   0x5   :  { %12 = vsyncpa [#allocation5 + $0x1], 0 }
   0x6   :  { %13 = vsyncpa [#allocation8], 0 }
   0x7   :  { %14 = vsyncpa [#allocation6], 0 }
   0x8   :  { %16 = vsyncpa [#allocation6 + $0x1], 0  ;;  %s2083_s17 = smov 0   ;;  %s2085_s18 = smov 0  }
   0x9   :  { %s2087_s19 = smov 0   ;;  %s2089_s20 = smov 0  }
   0xa   :  { %s2091_s21 = smov 0   ;;  %s2093_s22 = smov 0  }
   0xb   :  { %s2095_s23 = smov 0   ;;  %s2097_s0 = smov 0  }
   0xc   :  { %s2099_s24 = smov 0   ;;  %s2101_s25 = smov 0  }
   0xd   :  { %s2103_s26 = smov 0  }
   0xe LB: > { %2629 = sst [smem:[#allocation13_spill]] %s2001_s17  ;;  %s1531_s27 = sadd.s32 4294967295, %s2041_s26   ;;  %s2041_s26 = sphi %s2103_s26, %s22_s26   ;;  %s2037_s25 = sphi %s2101_s25, %s2660_s25   ;;  %s2033_s24 = sphi %s2099_s24, %s2652_s24   ;;  %s2029_s0 = sphi %s2097_s0, %s2659_s0   ;;  %s2025_s23 = sphi %s2095_s23, %s2651_s23   ;;  %s2021_s22 = sphi %s2093_s22, %s2658_s22   ;;  %s2017_s21 = sphi %s2091_s21, %s2657_s21   ;;  %s2013_s20 = sphi %s2089_s20, %s2656_s20   ;;  %s2009_s19 = sphi %s2087_s19, %s2655_s19   ;;  %s2005_s18 = sphi %s2085_s18, %s2654_s18   ;;  %s2001_s17 = sphi %s2083_s17, %s2653_s17  }
   0xf   : > { %2630 = sst [smem:[#allocation14_spill]] %s2033_s24  ;;  %s1532_s28 = sadd.s32 4294967294, %s2041_s26  }
  0x10   : > { %p75_p0 = scmp.ne.s32.totalorder %s2017_s21, %s2013_s20  ;;  %p2139_p1 = scmp.eq.s32.totalorder %s1531_s27, 0 }
  0x11   : > { %p142_p2 = scmp.ne.s32.totalorder %s2009_s19, %s2005_s18  ;;  %p143_p3 = scmp.eq.s32.totalorder %s1531_s27, 3 }
  0x12   : > { %s2631_s29 = scalar_select %p2139_p1, 1, 0 }
  0x13   : > { %p2147_p4 = por %p2139_p1, %p75_p0  ;;  %p148_p5 = scmp.ne.s32.totalorder %s2005_s18, %s2001_s17 }
  0x14   : > { %p2153_p6 = por %p143_p3, %p142_p2  ;;  %p149_p7 = scmp.eq.s32.totalorder %s1532_s28, 3 }
  0x15   : > { %s2632_s30 = scalar_select %p2147_p4, 1, 0 }
  0x16   : > { %s2633_s5 = scalar_select %p2153_p6, 1, 0 }
  0x17   : > { %p1533_p8 = scmp.ge.s32.totalorder %s2041_s26, 1  ;;  %p156_p9 = scmp.lt.s32.totalorder %s2041_s26, 5 }
  0x18   : > { %p2159_p10 = por %p149_p7, %p148_p5  ;;  %s2043_s8 = smov [#allocation7]  }
  0x19   : > { %p2163_p11 = pnand %p1533_p8, %p156_p9  ;;  %s171_s9 = sshll.u32 %s2043_s8, 4  ;;  %s172_s9 = int_to_ptr.vmem [resolvable:$true] %s171_s9 }
  0x1a   : > { %s2634_s6 = scalar_select %p2159_p10, 1, 0 }
  0x1b   : > { %s2636_s7 = scalar_select %p2163_p11, 1, 0 }
  0x1c   : > { %2635 = sst [smem:[#allocation15_spill]] %s2634_s6  ;;  %p1742_p12 = pneg %p2163_p11 }
  0x1d   : > { %s2638_s2 = sld [smem:[#allocation17_spill]] }
  0x1e   : > { %p2171_p13 = pnand %p1742_p12, %p2139_p1 }
  0x20   : > { %p1859_p2 = pneg %p2171_p13 }
  0x23   : > { %s1857_s13 = scalar_lea.hbm %s2638_s2, 512 }
  0x24   : > { %p1858_p0 = scmp.ne.s32.totalorder %s2638_s2, %s1857_s13  ;;  %p1864_p7 = scmp.lt.u32.totalorder %s1857_s13, %s2638_s2 }
  0x26   : > { %p1860_p3 = pnand %p1859_p2, %p1858_p0 }
  0x28   : > { %p1861_p5 = pneg %p1860_p3 }
  0x2a   : > { %p1866_p8 = pnand %p1864_p7, %p1861_p5 }
  0x2c   : > { %1869 = shalt.err (!%p1866_p8)
}
  0x2d   : > { %s1870_s27 = scalar_lea.vmem %s172_s9, 512  ;;  %p1878_p6 = scmp.lt.s32.totalorder %s172_s9, %s172_s9 }
  0x2e   : > { %p1871_p9 = scmp.ne.s32.totalorder %s172_s9, %s1870_s27  ;;  %p1879_p1 = scmp.lt.s32.totalorder %s1870_s27, %s1870_s27 }
  0x30   : > { %p1873_p12 = pnand %p1871_p9, %p1859_p2  ;;  %p1880_p4 = por %p1879_p1, %p1878_p6 }
  0x32   : > { %p1874_p10 = pneg %p1873_p12 }
  0x34   : > { %p1881_p11 = pnand %p1880_p4, %p1874_p10 }
  0x36   : > { %1884 = shalt.err (!%p1881_p11)
}
  0x37   : > { %s2044_s28 = smov 128   ;;  %s2045_s8 = smov 8  }
  0x38   : > { %1745 = dma.hbm_to_vmem [thread:$0]  (!%p2171_p13), %s2638_s2, 512, %s172_s9, [#allocation8], %s2044_s28, %s2044_s28, %s2045_s8  }
  0x39   : > { %s31_s13 = sadd.s32 1, %s2033_s24  ;;  %s34_s14 = sadd.s32 1, %s2037_s25 }
  0x3a   : > { %p32_p1 = scmp.ge.s32.totalorder %s31_s13, 2  ;;  %s62_s15 = sadd.s32 1, %s2021_s22 }
  0x3b   : > { %p69_p4 = scmp.ne.s32.totalorder %s2021_s22, %s2017_s21  ;;  %p70_p6 = scmp.eq.s32.totalorder %s2041_s26, 0 }
  0x3c   : > { %s2662_s13 = smov (%p32_p1, %s31_s13), 0  ;;  %s2664_s14 = smov (!%p32_p1, %s34_s14), %s2037_s25 }
  0x3d   : > { %2639 = sst [smem:[#allocation16_spill]] %s2662_s13  ;;  %p2200_p10 = por %p70_p6, %p69_p4 }
  0x3e   : > { %s128_s16 = ssub.s32 %s2033_s24, %s2662_s13  ;;  %p36_p11 = scmp.ge.s32.totalorder %s2664_s14, 2 }
  0x3f   : > { %s132_s9 = sadd.s32 1, %s2009_s19  ;;  %p1755_p13 = scmp.lt.s32.totalorder %s2041_s26, 4 }
  0x40   : > { %s188_s20 = sand.u32 1, %s2021_s22   ;;  %s2666_s14 = smov (%p36_p11, %s2664_s14), 0 }
  0x41   : > { %s1536_s27 = sshll.u32 %s188_s20, 3  ;;  %s59_s28 = ssub.s32 %s2037_s25, %s2666_s14 }
  0x42   : > { %p60_p0 = scmp.eq.s32.totalorder %s59_s28, 0  ;;  %s129_s8 = sor.u32 %s128_s16, %s59_s28 }
  0x43   : > { %p130_p2 = scmp.eq.s32.totalorder %s129_s8, 0  ;;  %s1537_s11 = sshll.u32 %s2037_s25, 7 }
  0x44   : > { %s2215_s12 = scalar_select %p60_p0, %s2021_s22, %s62_s15  }
  0x45   : > { %s2218_s2 = scalar_select %p130_p2, %s2009_s19, %s132_s9  }
  0x46   : > { %s2223_s6 = scalar_lea.hbm %s2613_s1, %s1537_s11  ;;  %s192_s17 = scalar_lea.vmem [#allocation4], %s1536_s27 }
  0x47   : > { %s199_s4 = sshll.u32 %s192_s17, 4  ;;  %p2231_p3 = pnand %p1755_p13, %p2200_p10  ;;  %s2225_s4 = int_to_ptr.vmem [resolvable:$true] %s199_s4 }
  0x48   : > { %s189_s16 = scalar_lea.sflag [#allocation5], %s188_s20  ;;  %s1885_s24 = scalar_lea.hbm %s2223_s6, 128 }
  0x49   : > { %p1886_p5 = scmp.ne.s32.totalorder %s2223_s6, %s1885_s24  ;;  %p1887_p7 = pneg %p2231_p3 }
  0x4a   : > { %s1890_s10 = scalar_lea.hbm %s2613_s1, 256  ;;  %p1891_p12 = scmp.lt.u32.totalorder %s2223_s6, %s2613_s1 }
  0x4b   : > { %p1888_p8 = pnand %p1887_p7, %p1886_p5  ;;  %p1892_p1 = scmp.lt.u32.totalorder %s1890_s10, %s1885_s24 }
  0x4c   : > { %p1894_p6 = scmp.lt.u32.totalorder %s1885_s24, %s2223_s6 }
  0x4d   : > { %p1889_p9 = pneg %p1888_p8  ;;  %p1893_p4 = por %p1892_p1, %p1891_p12 }
  0x4f   : > { %p1895_p10 = por %p1894_p6, %p1893_p4 }
  0x51   : > { %p1896_p11 = pnand %p1895_p10, %p1889_p9 }
  0x53   : > { %1899 = shalt.err (!%p1896_p11)
}
  0x54   : > { %s1900_s20 = scalar_lea.vmem %s2225_s4, 128  ;;  %s2046_s28 = smov [#allocation4]  }
  0x55   : > { %p1901_p13 = scmp.ne.s32.totalorder %s2225_s4, %s1900_s20  ;;  %s1905_s8 = sshll.u32 %s2046_s28, 4  ;;  %s1906_s8 = int_to_ptr.vmem [resolvable:$false] %s1905_s8 }
  0x56   : > { %s1907_s11 = scalar_lea.vmem %s1906_s8, 256  ;;  %p1908_p5 = scmp.lt.s32.totalorder %s2225_s4, %s1906_s8 }
  0x57   : > { %p1903_p0 = pnand %p1901_p13, %p1887_p7  ;;  %p1909_p8 = scmp.lt.s32.totalorder %s1907_s11, %s1900_s20 }
  0x59   : > { %p1904_p2 = pneg %p1903_p0  ;;  %p1910_p12 = por %p1909_p8, %p1908_p5 }
  0x5b   : > { %p1911_p1 = pnand %p1910_p12, %p1904_p2 }
  0x5d   : > { %1914 = shalt.err (!%p1911_p1)
}
  0x5e   : > { %1749 = dma.hbm_to_vmem [thread:$0]  (!%p2231_p3), %s2223_s6, 128, %s2225_s4, %s189_s16  }
  0x5f   : > { %p2642_p9 = scmp.ne.s32.totalorder %s2636_s7, 0 }
  0x60   : > { %s210_s24 = sand.u32 (!%p2642_p9), 1, %s2017_s21   ;;  %p2643_p7 = scmp.ne.s32.totalorder (!%p2642_p9), %s2632_s30, 0 }
  0x61   : > { %208 = sbr.rel (%p2642_p9) target bundleno = 1872 (0x750), region = 36  ;;  %s1539_s17 = sshll.u32 (!%p2642_p9), %s210_s24, 3 }
  0x62   : > { %s211_s13 = scalar_lea.sflag (!%p2642_p9), [#allocation5], %s210_s24  ;;  %s214_s10 = scalar_lea.vmem (!%p2642_p9), [#allocation4], %s1539_s17 }
  0x68   : > { %1988 = dma.done.wait (%p2643_p7), %s211_s13, 128  }
  0x69   : > { %1990 = vsyncadd (%p2643_p7), %s211_s13, 4294967168  ;;  %p2644_p4 = scmp.ne.s32.totalorder %s2631_s29, 0 }
  0x6b   : > { %1992 = dma.done.wait (%p2644_p4), [#allocation8], 512  }
  0x6c   : > { %1994 = vsyncadd (%p2644_p4), [#allocation8], 4294966784  ;;  %s240_s4 = sand.u32 1, %s2005_s18   ;;  %p1542_p3 = scmp.ne.s32.totalorder %s2025_s23, 0 }
  0x6d   : > { %s1541_s6 = sshll.u32 %s240_s4, 6  ;;  %v248_v0 = vld [vmem:[%s214_s10] sm:$0xff] (!%p1542_p3)  ;;  %vm249_vm0 = vcmask (!%p1542_p3), 261120  }
  0x6e   : > { %s2274_s7 = scalar_lea.vmem [#allocation9], %s1541_s6  ;;  %247 = sbr.rel (%p1542_p3) target bundleno = 117 (0x75), region = 48  ;;  %250 = vst.msk [vmem:[#allocation2] sm:$0xff] (!%p1542_p3), %vm249_vm0, %v248_v0 }
  0x75 PF: > { %v254_v1 = vld [vmem:[#allocation7] sm:$0xff]  ;;  %v255_v2 = vld [vmem:[#allocation7 + $0x8] sm:$0xff]  ;;  %v256_v3 = vld [vmem:[#allocation7 + $0x10] sm:$0xff]  ;;  %v2047_v4 = vmov 0.0|0.0   ;;  %vm2048_vm1 = vmmov 0   ;;  %v2049_v8 = vmov 0.0   ;;  %v265_v11 = vlaneseq }
  0x76   : > { %1686 = vmatprep.subr.bf16.mxu0 %v2047_v4  ;;  %v258_v5 = vmul.f32 0.01, %v254_v1  ;;  %v259_v6 = vmul.f32 0.01, %v255_v2  ;;  %v257_v7 = vld [vmem:[#allocation7 + $0x18] sm:$0xff]  ;;  %1606 = vmatprep.mubr.msk.f32.mxu0 %vm2048_vm1, %v2049_v8  ;;  %v270_v16 = vld [vmem:[#allocation2] sm:$0xff] }
  0x77   : > { %v260_v9 = vmul.f32 0.01, %v256_v3  ;;  %v261_v10 = vmul.f32 0.01, %v257_v7  ;;  %1692 = vmatprep.subr.bf16.mxu1 %v2047_v4  ;;  %1617 = vmatprep.mubr.msk.f32.mxu1 %vm2048_vm1, %v2049_v8  ;;  %v2050_v13 = vmov 1966171168   ;;  %v272_v18 = vcombine.high %v270_v16, %v270_v16 }
  0x78   : > { %v2283_v12 = vpack.c.bf16 %v259_v6, %v258_v5  ;;  %v274_v14 = vunpack.c.l.s4 %v2050_v13  ;;  %v266_v17 = vshrl.u32 %v265_v11, 7  ;;  %v340_v21 = vmax.f32 %v270_v16, 0.0  ;;  %s251_s29 = sld [smem:[#allocation3]]  ;;  %v262_v34 = vld [vmem:[%s2615_s3] sm:$0x1]  ;;  %s1557_s27 = sshll.u32 %s2029_s0, 4 }
  0x79   : > { %v2286_v15 = vpack.c.bf16 %v261_v10, %v260_v9  ;;  %vm341_vm2 = vcmask 261120   ;;  %vm329_vm3 = vcmask 253952   ;;  %v263_v36 = vmul.f32 0.01, %v262_v34  ;;  %s1432_s20 = sadd.s32 %s2025_s23, %s1557_s27  ;;  %s1435_s8 = sshll.u32 %s2274_s7, 4  ;;  %s2544_s8 = int_to_ptr.vmem [resolvable:$true] %s1435_s8 }
  0x7a   : > { %1688 = vmatpush3.bf16.msra.mxu0 %v2283_v12  ;;  %1694 = vmatpush3.bf16.msra.mxu1 %v2283_v12  ;;  %v275_v19 = vunpack.c.0.s8 %v274_v14  ;;  %v267_v37 = vsub.s32 0, %v266_v17  ;;  %s1554_s28 = sshll.u32 %s1432_s20, 7  ;;  %s2645_s17 = sld [smem:[#allocation18_spill]] }
  0x7b   : > { %1689 = vmatprep.subr.bf16.mxu0 %v2047_v4  ;;  %1695 = vmatprep.subr.bf16.mxu1 %v2047_v4  ;;  %s2548_s6 = scalar_lea.sflag [#allocation6], %s240_s4  ;;  %p2647_p10 = scmp.ne.s32.totalorder %s2633_s5, 0 }
  0x7c   : > { %v2291_v20 = vsub.s32 %v275_v19, %v266_v17  ;;  %v2332_v39 = vrot.slane %v263_v36, %v267_v37  ;;  %s2051_s23 = smov [#allocation9]  }
  0x7d   : > { %s1919_s0 = sshll.u32 %s2051_s23, 4  ;;  %s1920_s0 = int_to_ptr.vmem [resolvable:$false] %s1919_s0 }
  0x7e   : > { %1691 = vmatpush3.bf16.msra.mxu0 %v2286_v15  ;;  %1697 = vmatpush3.bf16.msra.mxu1 %v2286_v15  ;;  %v279_v22 = vrot.slane %v270_v16, %v2291_v20  ;;  %v286_v23 = vrot.slane %v272_v18, %v2291_v20  ;;  %s252_s30 = smul.f32 0.01, %s251_s29  ;;  %s1915_s29 = scalar_lea.vmem %s2544_s8, 1024 }
  0x7f   : > { %1698 = vmatprep.subr.bf16.mxu0 %v2047_v4  ;;  %1704 = vmatprep.subr.bf16.mxu1 %v2047_v4  ;;  %p1916_p6 = scmp.ne.s32.totalorder %s2544_s8, %s1915_s29  ;;  %p1922_p0 = scmp.lt.s32.totalorder %s2544_s8, %s1920_s0 }
  0x80   : > { %v287_v24 = vcombine.high %v279_v22, %v279_v22  ;;  %v288_v25 = vcombine.high %v286_v23, %v286_v23  ;;  %v295_v26 = vrot.slane %v279_v22, %v2291_v20  ;;  %v302_v27 = vrot.slane %v286_v23, %v2291_v20  ;;  %s253_s15 = sadd.f32 1.0, %s252_s30  ;;  %s2646_s13 = smov %s2645_s17 }
  0x81   : > { %1607 = vmatmul.mubr.msk.f32.vlgmr.msra.gmra.mrb[0].mxu0 %vm341_vm2, %v340_v21  ;;  %s2542_s10 = scalar_lea.hbm %s2645_s17, %s1554_s28  ;;  %p1917_p11 = pnand %p1916_p6, %p2647_p10 }
  0x82   : > { %1700 = vmatpush3.bf16.msra.mxu0 %v2283_v12  ;;  %1628 = vmatprep.mubr.msk.f32.mxu0 %vm2048_vm1, %v2049_v8  ;;  %v309_v28 = vrot.slane %v287_v24, %v2291_v20  ;;  %v316_v29 = vrot.slane %v288_v25, %v2291_v20  ;;  %v317_v30 = vcombine.high %v295_v26, %v295_v26  ;;  %v2329_v35 = vstv %s253_s15 }
  0x83   : > { %v318_v31 = vcombine.high %v302_v27, %v302_v27  ;;  %330 = vst.msk [vmem:[%s2274_s7] sm:$0x1] %vm329_vm3, %v295_v26  ;;  %334 = vst.msk [vmem:[%s2274_s7 + $0x20] sm:$0x1] %vm329_vm3, %v302_v27  ;;  %1701 = vmatprep.subr.bf16.mxu0 %v2047_v4  ;;  %v339_v38 = vmul.f32 %v2329_v35, %v270_v16  ;;  %p1918_p13 = pneg %p1917_p11 }
  0x84   : > { %v319_v32 = vcombine.high %v309_v28, %v309_v28  ;;  %v320_v33 = vcombine.high %v316_v29, %v316_v29  ;;  %331 = vst.msk [vmem:[%s2274_s7 + $0x8] sm:$0x1] %vm329_vm3, %v309_v28  ;;  %332 = vst.msk [vmem:[%s2274_s7 + $0x10] sm:$0x1] %vm329_vm3, %v317_v30 }
  0x85   : > { %335 = vst.msk [vmem:[%s2274_s7 + $0x28] sm:$0x1] %vm329_vm3, %v316_v29  ;;  %336 = vst.msk [vmem:[%s2274_s7 + $0x30] sm:$0x1] %vm329_vm3, %v318_v31 }
  0x86   : > { %1703 = vmatpush3.bf16.msra.mxu0 %v2286_v15  ;;  %333 = vst.msk [vmem:[%s2274_s7 + $0x18] sm:$0x1] %vm329_vm3, %v319_v32  ;;  %337 = vst.msk [vmem:[%s2274_s7 + $0x38] sm:$0x1] %vm329_vm3, %v320_v33 }
  0x87   : > { %1710 = vmatprep.subr.bf16.mxu0 %v2047_v4 }
 0x154   : > { %v411_v40 = vpop.f32.mrb[0].mxu0 }
 0x155   : > { %v415_v41 = vadd.f32 %v411_v40, %v339_v38  ;;  %v1608_v42 = vpop.f32.mrb[1].mxu0 }
 0x157   : > { %v416_v43 = vadd.f32 %v415_v41, %v2332_v39 }
 0x159   : > { %v418_v44 = vcombine.high %v416_v43, %v416_v43  ;;  %v425_v45 = vrot.slane %v416_v43, %v2291_v20  ;;  %v484_v46 = vmax.f32 %v416_v43, 0.0  ;;  %v483_v58 = vmul.f32 %v416_v43, %v2329_v35 }
 0x15b   : > { %v432_v47 = vrot.slane %v418_v44, %v2291_v20  ;;  %v433_v48 = vcombine.high %v425_v45, %v425_v45  ;;  %v441_v49 = vrot.slane %v425_v45, %v2291_v20  ;;  %1618 = vmatmul.mubr.msk.f32.vlgmr.msra.gmra.mrb[0].mxu1 %vm341_vm2, %v484_v46 }
 0x15c   : > { %1706 = vmatpush3.bf16.msra.mxu1 %v2283_v12  ;;  %1639 = vmatprep.mubr.msk.f32.mxu1 %vm2048_vm1, %v2049_v8 }
 0x15d   : > { %v434_v50 = vcombine.high %v432_v47, %v432_v47  ;;  %v448_v51 = vrot.slane %v432_v47, %v2291_v20  ;;  %v455_v52 = vrot.slane %v433_v48, %v2291_v20  ;;  %v463_v53 = vcombine.high %v441_v49, %v441_v49  ;;  %475 = vst.msk [vmem:[%s2274_s7 + $0x1] sm:$0x1] %vm329_vm3, %v441_v49 }
 0x15e   : > { %1707 = vmatprep.subr.bf16.mxu1 %v2047_v4 }
 0x15f   : > { %v462_v54 = vrot.slane %v434_v50, %v2291_v20  ;;  %v464_v55 = vcombine.high %v448_v51, %v448_v51  ;;  %v465_v56 = vcombine.high %v455_v52, %v455_v52  ;;  %476 = vst.msk [vmem:[%s2274_s7 + $0x9] sm:$0x1] %vm329_vm3, %v455_v52  ;;  %477 = vst.msk [vmem:[%s2274_s7 + $0x11] sm:$0x1] %vm329_vm3, %v463_v53 }
 0x160   : > { %479 = vst.msk [vmem:[%s2274_s7 + $0x21] sm:$0x1] %vm329_vm3, %v448_v51  ;;  %1709 = vmatpush3.bf16.msra.mxu1 %v2286_v15 }
 0x161   : > { %v466_v57 = vcombine.high %v462_v54, %v462_v54  ;;  %478 = vst.msk [vmem:[%s2274_s7 + $0x19] sm:$0x1] %vm329_vm3, %v465_v56  ;;  %480 = vst.msk [vmem:[%s2274_s7 + $0x29] sm:$0x1] %vm329_vm3, %v462_v54  ;;  %1716 = vmatprep.subr.bf16.mxu1 %v2047_v4 }
 0x162   : > { %481 = vst.msk [vmem:[%s2274_s7 + $0x31] sm:$0x1] %vm329_vm3, %v464_v55 }
 0x163   : > { %482 = vst.msk [vmem:[%s2274_s7 + $0x39] sm:$0x1] %vm329_vm3, %v466_v57 }
 0x22e   : > { %v554_v59 = vpop.f32.mrb[0].mxu1 }
 0x22f   : > { %v558_v60 = vadd.f32 %v554_v59, %v483_v58  ;;  %v1619_v61 = vpop.f32.mrb[1].mxu1 }
 0x231   : > { %v559_v62 = vadd.f32 %v558_v60, %v2332_v39 }
 0x233   : > { %v561_v63 = vcombine.high %v559_v62, %v559_v62  ;;  %v568_v0 = vrot.slane %v559_v62, %v2291_v20  ;;  %v627_v1 = vmax.f32 %v559_v62, 0.0  ;;  %v626_v17 = vmul.f32 %v559_v62, %v2329_v35 }
 0x235   : > { %v575_v2 = vrot.slane %v561_v63, %v2291_v20  ;;  %v576_v3 = vcombine.high %v568_v0, %v568_v0  ;;  %v584_v5 = vrot.slane %v568_v0, %v2291_v20  ;;  %1629 = vmatmul.mubr.msk.f32.vlgmr.msra.gmra.mrb[2].mxu0 %vm341_vm2, %v627_v1 }
 0x236   : > { %1712 = vmatpush3.bf16.msra.mxu0 %v2283_v12  ;;  %1650 = vmatprep.mubr.msk.f32.mxu0 %vm2048_vm1, %v2049_v8 }
 0x237   : > { %v577_v6 = vcombine.high %v575_v2, %v575_v2  ;;  %v591_v7 = vrot.slane %v575_v2, %v2291_v20  ;;  %v598_v9 = vrot.slane %v576_v3, %v2291_v20  ;;  %v606_v10 = vcombine.high %v584_v5, %v584_v5  ;;  %618 = vst.msk [vmem:[%s2274_s7 + $0x2] sm:$0x1] %vm329_vm3, %v584_v5 }
 0x238   : > { %1713 = vmatprep.subr.bf16.mxu0 %v2047_v4 }
 0x239   : > { %v605_v11 = vrot.slane %v577_v6, %v2291_v20  ;;  %v607_v13 = vcombine.high %v591_v7, %v591_v7  ;;  %v608_v14 = vcombine.high %v598_v9, %v598_v9  ;;  %619 = vst.msk [vmem:[%s2274_s7 + $0xa] sm:$0x1] %vm329_vm3, %v598_v9  ;;  %620 = vst.msk [vmem:[%s2274_s7 + $0x12] sm:$0x1] %vm329_vm3, %v606_v10 }
 0x23a   : > { %622 = vst.msk [vmem:[%s2274_s7 + $0x22] sm:$0x1] %vm329_vm3, %v591_v7  ;;  %1715 = vmatpush3.bf16.msra.mxu0 %v2286_v15 }
 0x23b   : > { %v609_v16 = vcombine.high %v605_v11, %v605_v11  ;;  %621 = vst.msk [vmem:[%s2274_s7 + $0x1a] sm:$0x1] %vm329_vm3, %v608_v14  ;;  %623 = vst.msk [vmem:[%s2274_s7 + $0x2a] sm:$0x1] %vm329_vm3, %v605_v11  ;;  %1722 = vmatprep.subr.bf16.mxu0 %v2047_v4 }
 0x23c   : > { %624 = vst.msk [vmem:[%s2274_s7 + $0x32] sm:$0x1] %vm329_vm3, %v607_v13 }
 0x23d   : > { %625 = vst.msk [vmem:[%s2274_s7 + $0x3a] sm:$0x1] %vm329_vm3, %v609_v16 }
 0x308   : > { %v697_v18 = vpop.f32.mrb[2].mxu0 }
 0x309   : > { %v701_v19 = vadd.f32 %v697_v18, %v626_v17  ;;  %v1630_v21 = vpop.f32.mrb[3].mxu0 }
 0x30b   : > { %v702_v22 = vadd.f32 %v701_v19, %v2332_v39 }
 0x30d   : > { %v704_v23 = vcombine.high %v702_v22, %v702_v22  ;;  %v711_v24 = vrot.slane %v702_v22, %v2291_v20  ;;  %v770_v25 = vmax.f32 %v702_v22, 0.0  ;;  %v769_v38 = vmul.f32 %v702_v22, %v2329_v35 }
 0x30f   : > { %v718_v26 = vrot.slane %v704_v23, %v2291_v20  ;;  %v719_v27 = vcombine.high %v711_v24, %v711_v24  ;;  %v727_v28 = vrot.slane %v711_v24, %v2291_v20  ;;  %1640 = vmatmul.mubr.msk.f32.vlgmr.msra.gmra.mrb[2].mxu1 %vm341_vm2, %v770_v25 }
 0x310   : > { %1718 = vmatpush3.bf16.msra.mxu1 %v2283_v12  ;;  %1661 = vmatprep.mubr.msk.f32.mxu1 %vm2048_vm1, %v2049_v8 }
 0x311   : > { %v720_v29 = vcombine.high %v718_v26, %v718_v26  ;;  %v734_v30 = vrot.slane %v718_v26, %v2291_v20  ;;  %v741_v31 = vrot.slane %v719_v27, %v2291_v20  ;;  %v749_v32 = vcombine.high %v727_v28, %v727_v28  ;;  %761 = vst.msk [vmem:[%s2274_s7 + $0x3] sm:$0x1] %vm329_vm3, %v727_v28 }
 0x312   : > { %1719 = vmatprep.subr.bf16.mxu1 %v2047_v4 }
 0x313   : > { %v748_v33 = vrot.slane %v720_v29, %v2291_v20  ;;  %v750_v34 = vcombine.high %v734_v30, %v734_v30  ;;  %v751_v36 = vcombine.high %v741_v31, %v741_v31  ;;  %762 = vst.msk [vmem:[%s2274_s7 + $0xb] sm:$0x1] %vm329_vm3, %v741_v31  ;;  %763 = vst.msk [vmem:[%s2274_s7 + $0x13] sm:$0x1] %vm329_vm3, %v749_v32 }
 0x314   : > { %765 = vst.msk [vmem:[%s2274_s7 + $0x23] sm:$0x1] %vm329_vm3, %v734_v30  ;;  %1721 = vmatpush3.bf16.msra.mxu1 %v2286_v15 }
 0x315   : > { %v752_v37 = vcombine.high %v748_v33, %v748_v33  ;;  %764 = vst.msk [vmem:[%s2274_s7 + $0x1b] sm:$0x1] %vm329_vm3, %v751_v36  ;;  %766 = vst.msk [vmem:[%s2274_s7 + $0x2b] sm:$0x1] %vm329_vm3, %v748_v33  ;;  %1728 = vmatprep.subr.bf16.mxu1 %v2047_v4 }
 0x316   : > { %767 = vst.msk [vmem:[%s2274_s7 + $0x33] sm:$0x1] %vm329_vm3, %v750_v34 }
 0x317   : > { %768 = vst.msk [vmem:[%s2274_s7 + $0x3b] sm:$0x1] %vm329_vm3, %v752_v37 }
 0x3e2   : > { %v840_v40 = vpop.f32.mrb[2].mxu1 }
 0x3e3   : > { %v844_v41 = vadd.f32 %v840_v40, %v769_v38  ;;  %v1641_v42 = vpop.f32.mrb[3].mxu1 }
 0x3e5   : > { %v845_v43 = vadd.f32 %v844_v41, %v2332_v39 }
 0x3e7   : > { %v847_v44 = vcombine.high %v845_v43, %v845_v43  ;;  %v854_v45 = vrot.slane %v845_v43, %v2291_v20  ;;  %v913_v46 = vmax.f32 %v845_v43, 0.0  ;;  %v912_v58 = vmul.f32 %v845_v43, %v2329_v35 }
 0x3e9   : > { %v861_v47 = vrot.slane %v847_v44, %v2291_v20  ;;  %v862_v48 = vcombine.high %v854_v45, %v854_v45  ;;  %v870_v49 = vrot.slane %v854_v45, %v2291_v20  ;;  %1651 = vmatmul.mubr.msk.f32.vlgmr.msra.gmra.mrb[4].mxu0 %vm341_vm2, %v913_v46 }
 0x3ea   : > { %1724 = vmatpush3.bf16.msra.mxu0 %v2283_v12  ;;  %1672 = vmatprep.mubr.msk.f32.mxu0 %vm2048_vm1, %v2049_v8 }
 0x3eb   : > { %v863_v50 = vcombine.high %v861_v47, %v861_v47  ;;  %v877_v51 = vrot.slane %v861_v47, %v2291_v20  ;;  %v884_v52 = vrot.slane %v862_v48, %v2291_v20  ;;  %v892_v53 = vcombine.high %v870_v49, %v870_v49  ;;  %904 = vst.msk [vmem:[%s2274_s7 + $0x4] sm:$0x1] %vm329_vm3, %v870_v49 }
 0x3ec   : > { %1725 = vmatprep.subr.bf16.mxu0 %v2047_v4 }
 0x3ed   : > { %v891_v54 = vrot.slane %v863_v50, %v2291_v20  ;;  %v893_v55 = vcombine.high %v877_v51, %v877_v51  ;;  %v894_v56 = vcombine.high %v884_v52, %v884_v52  ;;  %905 = vst.msk [vmem:[%s2274_s7 + $0xc] sm:$0x1] %vm329_vm3, %v884_v52  ;;  %906 = vst.msk [vmem:[%s2274_s7 + $0x14] sm:$0x1] %vm329_vm3, %v892_v53 }
 0x3ee   : > { %908 = vst.msk [vmem:[%s2274_s7 + $0x24] sm:$0x1] %vm329_vm3, %v877_v51  ;;  %1727 = vmatpush3.bf16.msra.mxu0 %v2286_v15 }
 0x3ef   : > { %v895_v57 = vcombine.high %v891_v54, %v891_v54  ;;  %907 = vst.msk [vmem:[%s2274_s7 + $0x1c] sm:$0x1] %vm329_vm3, %v894_v56  ;;  %909 = vst.msk [vmem:[%s2274_s7 + $0x2c] sm:$0x1] %vm329_vm3, %v891_v54 }
 0x3f0   : > { %910 = vst.msk [vmem:[%s2274_s7 + $0x34] sm:$0x1] %vm329_vm3, %v893_v55 }
 0x3f1   : > { %911 = vst.msk [vmem:[%s2274_s7 + $0x3c] sm:$0x1] %vm329_vm3, %v895_v57 }
 0x4bc   : > { %v983_v59 = vpop.f32.mrb[4].mxu0 }
 0x4bd   : > { %v987_v60 = vadd.f32 %v983_v59, %v912_v58  ;;  %v1652_v61 = vpop.f32.mrb[5].mxu0 }
 0x4bf   : > { %v988_v62 = vadd.f32 %v987_v60, %v2332_v39 }
 0x4c1   : > { %v990_v63 = vcombine.high %v988_v62, %v988_v62  ;;  %v997_v0 = vrot.slane %v988_v62, %v2291_v20  ;;  %v1056_v1 = vmax.f32 %v988_v62, 0.0 }
 0x4c3   : > { %v1004_v2 = vrot.slane %v990_v63, %v2291_v20  ;;  %v1005_v3 = vcombine.high %v997_v0, %v997_v0  ;;  %v1013_v5 = vrot.slane %v997_v0, %v2291_v20  ;;  %1662 = vmatmul.mubr.msk.f32.vlgmr.msra.gmra.mrb[4].mxu1 %vm341_vm2, %v1056_v1 }
 0x4c4   : > { %1730 = vmatpush3.bf16.msra.mxu1 %v2283_v12  ;;  %1683 = vmatprep.mubr.msk.f32.mxu1 %vm2048_vm1, %v2049_v8 }
 0x4c5   : > { %v1006_v6 = vcombine.high %v1004_v2, %v1004_v2  ;;  %v1020_v7 = vrot.slane %v1004_v2, %v2291_v20  ;;  %v1027_v9 = vrot.slane %v1005_v3, %v2291_v20  ;;  %v1035_v10 = vcombine.high %v1013_v5, %v1013_v5  ;;  %1047 = vst.msk [vmem:[%s2274_s7 + $0x5] sm:$0x1] %vm329_vm3, %v1013_v5 }
 0x4c6   : > { %1731 = vmatprep.subr.bf16.mxu1 %v2047_v4  ;;  %v1055_v4 = vmul.f32 %v988_v62, %v2329_v35 }
 0x4c7   : > { %v1034_v11 = vrot.slane %v1006_v6, %v2291_v20  ;;  %v1036_v12 = vcombine.high %v1020_v7, %v1020_v7  ;;  %v1037_v13 = vcombine.high %v1027_v9, %v1027_v9  ;;  %1048 = vst.msk [vmem:[%s2274_s7 + $0xd] sm:$0x1] %vm329_vm3, %v1027_v9  ;;  %1049 = vst.msk [vmem:[%s2274_s7 + $0x15] sm:$0x1] %vm329_vm3, %v1035_v10 }
 0x4c8   : > { %1051 = vst.msk [vmem:[%s2274_s7 + $0x25] sm:$0x1] %vm329_vm3, %v1020_v7  ;;  %1733 = vmatpush3.bf16.msra.mxu1 %v2286_v15 }
 0x4c9   : > { %v1038_v8 = vcombine.high %v1034_v11, %v1034_v11  ;;  %1050 = vst.msk [vmem:[%s2274_s7 + $0x1d] sm:$0x1] %vm329_vm3, %v1037_v13  ;;  %1052 = vst.msk [vmem:[%s2274_s7 + $0x2d] sm:$0x1] %vm329_vm3, %v1034_v11 }
 0x4ca   : > { %1053 = vst.msk [vmem:[%s2274_s7 + $0x35] sm:$0x1] %vm329_vm3, %v1036_v12 }
 0x4cb   : > { %1054 = vst.msk [vmem:[%s2274_s7 + $0x3d] sm:$0x1] %vm329_vm3, %v1038_v8 }
 0x596   : > { %v1126_v14 = vpop.f32.mrb[4].mxu1 }
 0x597   : > { %v1130_v16 = vadd.f32 %v1126_v14, %v1055_v4  ;;  %v1663_v17 = vpop.f32.mrb[5].mxu1 }
 0x599   : > { %v1131_v18 = vadd.f32 %v1130_v16, %v2332_v39 }
 0x59b   : > { %v1133_v19 = vcombine.high %v1131_v18, %v1131_v18  ;;  %v1140_v15 = vrot.slane %v1131_v18, %v2291_v20  ;;  %v1199_v21 = vmax.f32 %v1131_v18, 0.0  ;;  %v1198_v33 = vmul.f32 %v1131_v18, %v2329_v35 }
 0x59d   : > { %v1147_v22 = vrot.slane %v1133_v19, %v2291_v20  ;;  %v1148_v23 = vcombine.high %v1140_v15, %v1140_v15  ;;  %v1156_v24 = vrot.slane %v1140_v15, %v2291_v20  ;;  %1673 = vmatmul.mubr.msk.f32.vlgmr.msra.gmra.mrb[6].mxu0 %vm341_vm2, %v1199_v21 }
 0x59f   : > { %v1149_v25 = vcombine.high %v1147_v22, %v1147_v22  ;;  %v1163_v26 = vrot.slane %v1147_v22, %v2291_v20  ;;  %v1170_v27 = vrot.slane %v1148_v23, %v2291_v20  ;;  %v1178_v28 = vcombine.high %v1156_v24, %v1156_v24  ;;  %1190 = vst.msk [vmem:[%s2274_s7 + $0x6] sm:$0x1] %vm329_vm3, %v1156_v24 }
 0x5a1   : > { %v1177_v29 = vrot.slane %v1149_v25, %v2291_v20  ;;  %v1179_v30 = vcombine.high %v1163_v26, %v1163_v26  ;;  %v1180_v31 = vcombine.high %v1170_v27, %v1170_v27  ;;  %1191 = vst.msk [vmem:[%s2274_s7 + $0xe] sm:$0x1] %vm329_vm3, %v1170_v27  ;;  %1192 = vst.msk [vmem:[%s2274_s7 + $0x16] sm:$0x1] %vm329_vm3, %v1178_v28 }
 0x5a2   : > { %1194 = vst.msk [vmem:[%s2274_s7 + $0x26] sm:$0x1] %vm329_vm3, %v1163_v26 }
 0x5a3   : > { %v1181_v32 = vcombine.high %v1177_v29, %v1177_v29  ;;  %1193 = vst.msk [vmem:[%s2274_s7 + $0x1e] sm:$0x1] %vm329_vm3, %v1180_v31  ;;  %1195 = vst.msk [vmem:[%s2274_s7 + $0x2e] sm:$0x1] %vm329_vm3, %v1177_v29 }
 0x5a4   : > { %1196 = vst.msk [vmem:[%s2274_s7 + $0x36] sm:$0x1] %vm329_vm3, %v1179_v30 }
 0x5a5   : > { %1197 = vst.msk [vmem:[%s2274_s7 + $0x3e] sm:$0x1] %vm329_vm3, %v1181_v32 }
 0x670   : > { %v1269_v34 = vpop.f32.mrb[6].mxu0 }
 0x671   : > { %v1273_v36 = vadd.f32 %v1269_v34, %v1198_v33  ;;  %v1674_v37 = vpop.f32.mrb[7].mxu0 }
 0x673   : > { %v1274_v38 = vadd.f32 %v1273_v36, %v2332_v39 }
 0x675   : > { %v1276_v40 = vcombine.high %v1274_v38, %v1274_v38  ;;  %v1283_v41 = vrot.slane %v1274_v38, %v2291_v20  ;;  %v1342_v42 = vmax.f32 %v1274_v38, 0.0 }
 0x677   : > { %v1290_v43 = vrot.slane %v1276_v40, %v2291_v20  ;;  %v1291_v44 = vcombine.high %v1283_v41, %v1283_v41  ;;  %v1299_v45 = vrot.slane %v1283_v41, %v2291_v20  ;;  %1684 = vmatmul.mubr.msk.f32.vlgmr.msra.gmra.mrb[6].mxu1 %vm341_vm2, %v1342_v42 }
 0x679   : > { %v1292_v46 = vcombine.high %v1290_v43, %v1290_v43  ;;  %v1306_v47 = vrot.slane %v1290_v43, %v2291_v20  ;;  %v1313_v48 = vrot.slane %v1291_v44, %v2291_v20  ;;  %v1321_v49 = vcombine.high %v1299_v45, %v1299_v45  ;;  %1333 = vst.msk [vmem:[%s2274_s7 + $0x7] sm:$0x1] %vm329_vm3, %v1299_v45 }
 0x67b   : > { %v1320_v50 = vrot.slane %v1292_v46, %v2291_v20  ;;  %v1322_v51 = vcombine.high %v1306_v47, %v1306_v47  ;;  %v1323_v52 = vcombine.high %v1313_v48, %v1313_v48  ;;  %1334 = vst.msk [vmem:[%s2274_s7 + $0xf] sm:$0x1] %vm329_vm3, %v1313_v48  ;;  %1335 = vst.msk [vmem:[%s2274_s7 + $0x17] sm:$0x1] %vm329_vm3, %v1321_v49 }
 0x67c   : > { %1337 = vst.msk [vmem:[%s2274_s7 + $0x27] sm:$0x1] %vm329_vm3, %v1306_v47 }
 0x67d   : > { %v1324_v53 = vcombine.high %v1320_v50, %v1320_v50  ;;  %1336 = vst.msk [vmem:[%s2274_s7 + $0x1f] sm:$0x1] %vm329_vm3, %v1323_v52  ;;  %1338 = vst.msk [vmem:[%s2274_s7 + $0x2f] sm:$0x1] %vm329_vm3, %v1320_v50 }
 0x67e   : > { %1339 = vst.msk [vmem:[%s2274_s7 + $0x37] sm:$0x1] %vm329_vm3, %v1322_v51 }
 0x67f   : > { %1340 = vst.msk [vmem:[%s2274_s7 + $0x3f] sm:$0x1] %vm329_vm3, %v1324_v53  ;;  %s1921_s7 = scalar_lea.vmem %s1920_s0, 2048 }
 0x680   : > { %p1923_p2 = scmp.lt.s32.totalorder %s1921_s7, %s1915_s29 }
 0x682   : > { %p1924_p5 = por %p1923_p2, %p1922_p0 }
 0x684   : > { %p1925_p8 = pnand %p1924_p5, %p1918_p13 }
 0x686   : > { %1928 = shalt.err (!%p1925_p8)
}
 0x687   : > { %s1929_s4 = scalar_lea.hbm %s2542_s10, 1024  ;;  %s1933_s16 = scalar_lea.hbm %s2646_s13, 4096 }
 0x688   : > { %p1930_p12 = scmp.ne.s32.totalorder %s2542_s10, %s1929_s4  ;;  %p1934_p7 = scmp.lt.u32.totalorder %s2542_s10, %s2646_s13 }
 0x689   : > { %p1935_p4 = scmp.lt.u32.totalorder %s1933_s16, %s1929_s4  ;;  %p1937_p6 = scmp.lt.u32.totalorder %s1929_s4, %s2542_s10 }
 0x68a   : > { %p1931_p1 = pnand %p1930_p12, %p2647_p10 }
 0x68b   : > { %p1936_p3 = por %p1935_p4, %p1934_p7 }
 0x68c   : > { %p1932_p9 = pneg %p1931_p1 }
 0x68d   : > { %p1938_p11 = por %p1937_p6, %p1936_p3 }
 0x68f   : > { %p1939_p13 = pnand %p1938_p11, %p1932_p9 }
 0x691   : > { %1942 = shalt.err (!%p1939_p13)
}
 0x692   : > { %s2052_s20 = smov 128   ;;  %s2053_s28 = smov 256   ;;  %v1341_v20 = vmul.f32 %v1274_v38, %v2329_v35 }
 0x693   : > { %s2054_s11 = smov 8  }
 0x694   : > { %1740 = dma.vmem_to_hbm [thread:$0]  (%p2647_p10), %s2544_s8, 1024, %s2542_s10, %s2548_s6, %s2052_s20, %s2053_s28, %s2054_s11  }
 0x74a   : > { %v1412_v54 = vpop.f32.mrb[6].mxu1 }
 0x74b   : > { %v1416_v55 = vadd.f32 %v1412_v54, %v1341_v20  ;;  %v1685_v56 = vpop.f32.mrb[7].mxu1 }
 0x74d   : > { %v1417_v57 = vadd.f32 %v1416_v55, %v2332_v39 }
 0x74f   : > { %1418 = vst.msk [vmem:[#allocation2] sm:$0xff] %vm341_vm2, %v1417_v57 }
 0x750 PF: > { %s2648_s24 = sld [smem:[#allocation13_spill]]  ;;  %s2649_s17 = sld [smem:[#allocation15_spill]] }
 0x751   : > { %p1757_p0 = scmp.ge.s32.totalorder %s2041_s26, 2 }
 0x756   : > { %s1450_s29 = sand.u32 1, %s2648_s24   ;;  %p2650_p2 = scmp.ne.s32.totalorder %s2649_s17, 0 }
 0x757   : > { %s1451_s23 = scalar_lea.sflag [#allocation6], %s1450_s29 }
 0x758   : > { %p1751_p5 = pnand %p1757_p0, %p2650_p2 }
 0x75a   : > { %1996 = dma.done.wait (!%p1751_p5), %s1451_s23, 1024  }
 0x75b   : > { %1998 = vsyncadd (!%p1751_p5), %s1451_s23, 4294966272  ;;  %s22_s26 = sadd.s32 1, %s2041_s26   ;;  %s2651_s23 = sld [smem:[#allocation14_spill]] }
 0x75c   : > { %p19_p10 = scmp.ge.s32.totalorder %s22_s26, 6   ;;  %s2652_s24 = sld [smem:[#allocation16_spill]] }
 0x75d   : > { %s2653_s17 = smov %s2005_s18  ;;  %s2654_s18 = smov %s2009_s19 }
 0x75e   : > { %s2655_s19 = smov %s2218_s2  ;;  %s2656_s20 = smov %s2017_s21 }
 0x75f   : > { %s2657_s21 = smov %s2021_s22  ;;  %s2658_s22 = smov %s2215_s12 }
 0x760   : > { %s2659_s0 = smov %s2037_s25  ;;  %s2660_s25 = smov %s2666_s14 }
 0x761   :  { %21 = sbr.rel (!%p19_p10) target bundleno = 14 (0xe), region = 89 }
 0x768   :  { %1456 = vsyncpa [#allocation5], 1 }
 0x769   :  { %1458 = vsyncpa [#allocation5 + $0x1], 1 }
 0x76a   :  { %1459 = vsyncpa [#allocation8], 1 }
 0x76b   :  { %1460 = vsyncpa [#allocation6], 1 }
 0x76c   :  { %1462 = vsyncpa [#allocation6 + $0x1], 1 }

</bundles_post_ra>
